<compile_context>
chip_gen: v7x
topology: tpu7x:2x2x1
jax: 0.10.0
libtpu: 0.0.40
codegen_flags: <defaults>
</compile_context>

<pallas_src>
import functools

import jax
import jax.numpy as jnp
from jax.experimental import pallas as pl
from jax.experimental.pallas import tpu as pltpu


def _round_up(v, m):
    return (v + m - 1) // m * m


def _sublane(dtype):
    # sublane granule: 8 rows for 32-bit, 16 for 16-bit, 32 for 8-bit types
    return max(8, 32 // jnp.dtype(dtype).itemsize)


def _pick_block(total, pref):
    """Largest multiple of 128 that divides `total` and is <= pref.

    `total` is always a multiple of 128 here (HW is padded).
    """
    pref = max(128, min(pref, total))
    b = pref - pref % 128
    while total % b:
        b -= 128
    return b


# --------------------------------------------------------------------------
# Kernel 1: fused k/q/v 1x1 convolutions  (grid = (batch, token tiles))
# --------------------------------------------------------------------------
def _proj_kernel(x_ref, w_ref, k_ref, q_ref, v_ref):
    # x_ref : (Cp, tp)    w_ref : (3*Hp, Cp)    k/q/v : (Hp, tp)
    hp = k_ref.shape[0]
    kqv = jnp.dot(w_ref[...], x_ref[...], preferred_element_type=jnp.float32)
    k_ref[...] = kqv[:hp, :].astype(k_ref.dtype)
    q_ref[...] = kqv[hp:2 * hp, :].astype(q_ref.dtype)
    v_ref[...] = kqv[2 * hp:, :].astype(v_ref.dtype)


# --------------------------------------------------------------------------
# Kernel 2: affinity + batch-dim softmax + aggregation + output 1x1 conv
# --------------------------------------------------------------------------
def _attn_kernel(k_ref, q_ref, vi_ref, vj_ref, wo_ref, o_ref, acc_ref, *,
                 approx_recip):
    # k_ref  : (N, Hp, ti)   keys    for the current i (reduction) tile
    # q_ref  : (N, Hp, tj)   queries for the current j (output) tile
    # vi_ref : (N, Hp, ti)   values  for the current i tile
    # vj_ref : (N, Hp, tj)   values  for the current j tile ("+ v" residual)
    # wo_ref : (Cp, Hp)      output 1x1 conv weight
    # o_ref  : (N, Cp, tj)   output tile
    # acc_ref: (N, Hp, tj)   f32 accumulator, resident across the i axis
    i = pl.program_id(1)

    @pl.when(i == 0)
    def _():
        # fold the "+ v" residual into the accumulator initialisation
        acc_ref[...] = vj_ref[...].astype(jnp.float32)

    # affinity[n, i, j] = sum_h k[n, h, i] * q[n, h, j]   (== torch.bmm(k, q))
    s = jnp.einsum("nhi,nhj->nij", k_ref[...], q_ref[...],
                   preferred_element_type=jnp.float32)

    # softmax over dim=0 -- the BATCH dimension, exactly as the PyTorch module.
    # It is elementwise in (i, j), so every tile is self-contained.
    m = jnp.max(s, axis=0, keepdims=True)
    e = jnp.exp(s - m)
    denom = jnp.sum(e, axis=0, keepdims=True)
    if approx_recip:
        p = e * pl.reciprocal(denom, approx=True)
    else:
        p = e / denom

    # y[n, h, j] += sum_i v[n, h, i] * p[n, i, j]   (== torch.bmm(v, affinity))
    acc_ref[...] += jnp.einsum("nhi,nij->nhj",
                               vi_ref[...], p.astype(vi_ref.dtype),
                               preferred_element_type=jnp.float32)

    @pl.when(i == pl.num_programs(1) - 1)
    def _():
        wo = wo_ref[...]
        for b in range(o_ref.shape[0]):  # small static batch -> unrolled
            o_ref[b] = jnp.dot(wo, acc_ref[b].astype(wo.dtype),
                               preferred_element_type=jnp.float32
                               ).astype(o_ref.dtype)


# --------------------------------------------------------------------------
# Wrapper
# --------------------------------------------------------------------------
def non_local_pallas(x_nchw, wk, wq, wv, wo, *,
                     block_j=512, block_i=512, block_proj=1024,
                     compute_dtype=None, vmem_limit_bytes=None):
    """NonLocal forward.

    x_nchw   : (N, C, H, W)
    wk/wq/wv : (hidden, C, 1, 1)   (torch Conv2d weight layout)
    wo       : (C, hidden, 1, 1)
    """
    n, c, h, w = x_nchw.shape
    hw = h * w
    hidden = wk.shape[0]
    out_dtype = x_nchw.dtype

    if compute_dtype is None:
        # bf16 MXU operands by default; accumulation stays f32.
        compute_dtype = jnp.bfloat16
    compute_dtype = jnp.dtype(compute_dtype)
    approx_recip = compute_dtype != jnp.dtype(jnp.float32)
    cbytes = compute_dtype.itemsize
    obytes = jnp.dtype(out_dtype).itemsize

    # Channel dims are sublane dims in the (N, ch, HW) layout: only pad to the
    # sublane granule (or to 128 once they exceed 128 for full MXU fill).
    sub = _sublane(compute_dtype)
    cp = _round_up(c, sub) if c <= 128 else _round_up(c, 128)
    hp = _round_up(hidden, sub) if hidden <= 128 else _round_up(hidden, 128)
    # HW is the lane dim: pad to a multiple of 128 (exact, see header comment).
    hw_p = _round_up(hw, 128)

    # (N, C, H, W) -> (N, Cp, HWp): reshape + zero-pad, NO transposes.
    x_flat = x_nchw.reshape(n, c, hw)
    x_p = jnp.pad(x_flat, ((0, 0), (0, cp - c), (0, hw_p - hw))
                  ).astype(compute_dtype)

    def pad_w(wgt, rows, cols):
        mat = wgt[:, :, 0, 0]
        return jnp.pad(mat, ((0, rows - mat.shape[0]), (0, cols - mat.shape[1])))

    # fused k/q/v projection weight (3*Hp, Cp); weights pre-cast once here.
    w_kqv = jnp.concatenate([pad_w(wk, hp, cp),
                             pad_w(wq, hp, cp),
                             pad_w(wv, hp, cp)], axis=0).astype(compute_dtype)
    wo_p = pad_w(wo, cp, hp).astype(compute_dtype)

    # ---- tile choices -------------------------------------------------------
    tp = _pick_block(hw_p, block_proj)
    bj = block_j
    if hw_p >= 256:
        bj = min(bj, hw_p // 2)          # keep >= 2 parallel j tiles (v7x megacore)
    tj = _pick_block(hw_p, bj)
    ti = _pick_block(hw_p, block_i)

    # ---- VMEM budget (double-buffered I/O + scratch + softmax temporaries) --
    attn_vmem = (2 * cbytes * (2 * n * hp * ti + 2 * n * hp * tj + cp * hp)
                 + 2 * obytes * n * cp * tj
                 + 4 * n * hp * tj                 # f32 accumulator
                 + 4 * 4 * n * ti * tj)            # s/e/p f32 temporaries + slack
    proj_vmem = (2 * cbytes * (cp * tp + 3 * hp * cp + 3 * hp * tp)
                 + 4 * 3 * hp * tp)
    if vmem_limit_bytes is None:
        vmem_limit_bytes = int(min(max(32 << 20, 2 * max(attn_vmem, proj_vmem)),
                                   96 << 20))

    # ---- pass 1: fused k/q/v 1x1 convolutions ------------------------------
    proj_cost = pl.CostEstimate(
        flops=int(2 * n * hw_p * cp * 3 * hp),
        transcendentals=0,
        bytes_accessed=int((x_p.size + w_kqv.size + 3 * n * hp * hw_p) * cbytes))
    kqv_shape = jax.ShapeDtypeStruct((n, hp, hw_p), compute_dtype)
    k_a, q_a, v_a = pl.pallas_call(
        _proj_kernel,
        out_shape=(kqv_shape, kqv_shape, kqv_shape),
        grid=(n, hw_p // tp),
        in_specs=[
            pl.BlockSpec((None, cp, tp), lambda b, p: (b, 0, p)),
            pl.BlockSpec((3 * hp, cp), lambda b, p: (0, 0)),
        ],
        out_specs=(
            pl.BlockSpec((None, hp, tp), lambda b, p: (b, 0, p)),
            pl.BlockSpec((None, hp, tp), lambda b, p: (b, 0, p)),
            pl.BlockSpec((None, hp, tp), lambda b, p: (b, 0, p)),
        ),
        compiler_params=pltpu.CompilerParams(
            dimension_semantics=("parallel", "parallel"),
            vmem_limit_bytes=vmem_limit_bytes),
        cost_estimate=proj_cost,
    )(x_p, w_kqv)

    # ---- pass 2: tiled affinity + batch-dim softmax + aggregation + conv ---
    attn_cost = pl.CostEstimate(
        flops=int(4 * n * hw_p * hw_p * hp + 2 * n * hw_p * hp * cp),
        transcendentals=int(n * hw_p * hw_p),
        bytes_accessed=int(((2 + 2 * (hw_p // tj)) * n * hp * hw_p + wo_p.size)
                           * cbytes + n * cp * hw_p * obytes))

    out_p = pl.pallas_call(
        functools.partial(_attn_kernel, approx_recip=approx_recip),
        out_shape=jax.ShapeDtypeStruct((n, cp, hw_p), out_dtype),
        grid=(hw_p // tj, hw_p // ti),
        in_specs=[
            pl.BlockSpec((n, hp, ti), lambda j, i: (0, 0, i)),   # k   (i tile)
            pl.BlockSpec((n, hp, tj), lambda j, i: (0, 0, j)),   # q   (j tile)
            pl.BlockSpec((n, hp, ti), lambda j, i: (0, 0, i)),   # v_i (i tile)
            pl.BlockSpec((n, hp, tj), lambda j, i: (0, 0, j)),   # v_j (j tile)
            pl.BlockSpec((cp, hp), lambda j, i: (0, 0)),         # wo
        ],
        out_specs=pl.BlockSpec((n, cp, tj), lambda j, i: (0, 0, j)),
        scratch_shapes=[pltpu.VMEM((n, hp, tj), jnp.float32)],
        compiler_params=pltpu.CompilerParams(
            dimension_semantics=("parallel", "arbitrary"),
            vmem_limit_bytes=vmem_limit_bytes),
        cost_estimate=attn_cost,
    )(k_a, q_a, v_a, v_a, wo_p)

    # drop channel / token padding and go back to NCHW (reshape only)
    return out_p[:, :c, :hw].reshape(n, c, h, w)


# --------------------------------------------------------------------------
# Pure-JAX reference mirroring the PyTorch forward exactly
# --------------------------------------------------------------------------
def non_local_ref(x, wk, wq, wv, wo):
    n, c, h, w = x.shape
    hw = h * w
    hidden = wk.shape[0]

    def conv1x1(xx, wgt):
        return jnp.einsum("nchw,oc->nohw", xx, wgt[:, :, 0, 0])

    k = conv1x1(x, wk).reshape(n, hidden, hw).transpose(0, 2, 1)  # (n, hw, ch)
    q = conv1x1(x, wq).reshape(n, hidden, hw)                     # (n, ch, hw)
    v = conv1x1(x, wv).reshape(n, hidden, hw)                     # (n, ch, hw)
    aff = jnp.einsum("nik,nkj->nij", k, q)                        # (n, hw, hw)
    aff = jax.nn.softmax(aff, axis=0)                             # batch-dim softmax
    y = jnp.einsum("nci,nij->ncj", v, aff)                        # (n, ch, hw)
    out = conv1x1((y + v).reshape(n, hidden, h, w), wo)           # (n, c, h, w)
    return out


if __name__ == "__main__":
    # Small deterministic example: in_chs=4, hidden_chs=4 (default), 16x16 spatial.
    N, C, H, W = 2, 4, 16, 16
    HIDDEN = C  # hidden_chs defaults to in_chs

    key = jax.random.PRNGKey(0)
    kx, kk, kq, kv, ko = jax.random.split(key, 5)
    x = jax.random.normal(kx, (N, C, H, W), dtype=jnp.float32)
    wk = jax.random.normal(kk, (HIDDEN, C, 1, 1), dtype=jnp.float32) * 0.1
    wq = jax.random.normal(kq, (HIDDEN, C, 1, 1), dtype=jnp.float32) * 0.1
    wv = jax.random.normal(kv, (HIDDEN, C, 1, 1), dtype=jnp.float32) * 0.1
    wo = jax.random.normal(ko, (C, HIDDEN, 1, 1), dtype=jnp.float32) * 0.1

    ref = non_local_ref(x, wk, wq, wv, wo)

    # 1) full-precision path (f32 operands, exact softmax), 128-token tiles ->
    #    2x2 (j, i) grid at HW=256, exercising accumulator init/finalize.
    out_f32 = non_local_pallas(x, wk, wq, wv, wo, compute_dtype=jnp.float32,
                               block_j=128, block_i=128, block_proj=128)
    out_f32 = jax.block_until_ready(out_f32)
    assert out_f32.shape == (N, C, H, W)
    err = float(jnp.max(jnp.abs(out_f32 - ref)))
    assert jnp.allclose(out_f32, ref, atol=1e-3, rtol=1e-3), \
        f"f32 path mismatch vs JAX reference, max_err={err}"

    # 2) default fast path: bf16 MXU operands, f32 accumulation.
    out_bf16 = jax.block_until_ready(non_local_pallas(x, wk, wq, wv, wo))
    err = float(jnp.max(jnp.abs(out_bf16 - ref)))
    assert jnp.allclose(out_bf16, ref, atol=5e-2, rtol=5e-2), \
        f"bf16 path mismatch vs JAX reference, max_err={err}"

    # 3) non-multiple-of-128 spatial size (10x10 -> HW padded 100 -> 128) and
    #    odd channel counts, exercising the zero-padding paths.
    C2, HID2, H2, W2 = 5, 3, 10, 10
    keys2 = jax.random.split(jax.random.PRNGKey(1), 5)
    x2 = jax.random.normal(keys2[0], (N, C2, H2, W2), dtype=jnp.float32)
    wk2 = jax.random.normal(keys2[1], (HID2, C2, 1, 1), dtype=jnp.float32) * 0.1
    wq2 = jax.random.normal(keys2[2], (HID2, C2, 1, 1), dtype=jnp.float32) * 0.1
    wv2 = jax.random.normal(keys2[3], (HID2, C2, 1, 1), dtype=jnp.float32) * 0.1
    wo2 = jax.random.normal(keys2[4], (C2, HID2, 1, 1), dtype=jnp.float32) * 0.1
    out2 = jax.block_until_ready(non_local_pallas(x2, wk2, wq2, wv2, wo2))
    ref2 = non_local_ref(x2, wk2, wq2, wv2, wo2)
    err2 = float(jnp.max(jnp.abs(out2 - ref2)))
    assert out2.shape == (N, C2, H2, W2)
    assert jnp.allclose(out2, ref2, atol=5e-2, rtol=5e-2), \
        f"padded path mismatch vs JAX reference, max_err={err2}"

    print("KERNEL_OK")
</pallas_src>

<mosaic_0001>
module attributes {stable_mosaic.version = 11 : i64} {
  func.func @_proj_kernel(%arg0: i32, %arg1: i32, %arg2: memref<1x8x128xf32, #tpu.memory_space<vmem>>, %arg3: memref<24x8xf32, #tpu.memory_space<vmem>>, %arg4: memref<1x8x128xf32, #tpu.memory_space<vmem>>, %arg5: memref<1x8x128xf32, #tpu.memory_space<vmem>>, %arg6: memref<1x8x128xf32, #tpu.memory_space<vmem>>) attributes {dimension_semantics = [#tpu.dimension_semantics<parallel>, #tpu.dimension_semantics<parallel>], iteration_bounds = array<i64: 2, 2>, scalar_prefetch = 0 : i64, scratch_operands = 0 : i64, tpu.core_type = #tpu.core_type<tc>, window_params = [{transform_indices = @transform_0, window_bounds = array<i64: 1, 8, 128>}, {pipeline_mode = #tpu.pipeline_mode<synchronous>, transform_indices = @transform_1, window_bounds = array<i64: 24, 8>}, {transform_indices = @transform_2, window_bounds = array<i64: 1, 8, 128>}, {transform_indices = @transform_3, window_bounds = array<i64: 1, 8, 128>}, {transform_indices = @transform_4, window_bounds = array<i64: 1, 8, 128>}]} {
    %c0 = arith.constant 0 : index
    %c0_0 = arith.constant 0 : index
    %0 = vector.load %arg3[%c0, %c0_0] : memref<24x8xf32, #tpu.memory_space<vmem>>, vector<24x8xf32>
    %c0_1 = arith.constant 0 : index
    %c0_2 = arith.constant 0 : index
    %c0_3 = arith.constant 0 : index
    %1 = vector.load %arg2[%c0_1, %c0_2, %c0_3] : memref<1x8x128xf32, #tpu.memory_space<vmem>>, vector<1x8x128xf32>
    %2 = vector.shape_cast %1 : vector<1x8x128xf32> to vector<8x128xf32>
    %cst = arith.constant dense<0.000000e+00> : vector<24x128xf32>
    %3 = tpu.matmul %0, %2, %cst {dimension_numbers = #tpu.dot_dimension_numbers<[1], [0], [0], [1], [0, 0, 1, 1], [], []>} : vector<24x8xf32>, vector<8x128xf32>, vector<24x128xf32> -> vector<24x128xf32>
    %4 = vector.extract_strided_slice %3 {offsets = [0, 0], sizes = [8, 128], strides = [1, 1]} : vector<24x128xf32> to vector<8x128xf32>
    %c0_4 = arith.constant 0 : index
    %c0_5 = arith.constant 0 : index
    %c0_6 = arith.constant 0 : index
    %5 = vector.load %arg4[%c0_4, %c0_5, %c0_6] : memref<1x8x128xf32, #tpu.memory_space<vmem>>, vector<1x8x128xf32>
    %6 = vector.shape_cast %5 : vector<1x8x128xf32> to vector<8x128xf32>
    %7 = vector.shape_cast %4 : vector<8x128xf32> to vector<1x8x128xf32>
    tpu.vector_store %arg4[%c0_4, %c0_5, %c0_6], %7 {strides = array<i32>} : memref<1x8x128xf32, #tpu.memory_space<vmem>>, vector<1x8x128xf32>,
    %8 = vector.extract_strided_slice %3 {offsets = [8, 0], sizes = [8, 128], strides = [1, 1]} : vector<24x128xf32> to vector<8x128xf32>
    %c0_7 = arith.constant 0 : index
    %c0_8 = arith.constant 0 : index
    %c0_9 = arith.constant 0 : index
    %9 = vector.load %arg5[%c0_7, %c0_8, %c0_9] : memref<1x8x128xf32, #tpu.memory_space<vmem>>, vector<1x8x128xf32>
    %10 = vector.shape_cast %9 : vector<1x8x128xf32> to vector<8x128xf32>
    %11 = vector.shape_cast %8 : vector<8x128xf32> to vector<1x8x128xf32>
    tpu.vector_store %arg5[%c0_7, %c0_8, %c0_9], %11 {strides = array<i32>} : memref<1x8x128xf32, #tpu.memory_space<vmem>>, vector<1x8x128xf32>,
    %12 = vector.extract_strided_slice %3 {offsets = [16, 0], sizes = [8, 128], strides = [1, 1]} : vector<24x128xf32> to vector<8x128xf32>
    %c0_10 = arith.constant 0 : index
    %c0_11 = arith.constant 0 : index
    %c0_12 = arith.constant 0 : index
    %13 = vector.load %arg6[%c0_10, %c0_11, %c0_12] : memref<1x8x128xf32, #tpu.memory_space<vmem>>, vector<1x8x128xf32>
    %14 = vector.shape_cast %13 : vector<1x8x128xf32> to vector<8x128xf32>
    %15 = vector.shape_cast %12 : vector<8x128xf32> to vector<1x8x128xf32>
    tpu.vector_store %arg6[%c0_10, %c0_11, %c0_12], %15 {strides = array<i32>} : memref<1x8x128xf32, #tpu.memory_space<vmem>>, vector<1x8x128xf32>,
    return
  }
  func.func @transform_0(%arg0: i32, %arg1: i32) -> (i32, i32, i32) {
    %c0_i32 = arith.constant 0 : i32
    %c0_i32_0 = arith.constant 0 : i32
    return %arg0, %c0_i32, %arg1 : i32, i32, i32
  }
  func.func @transform_1(%arg0: i32, %arg1: i32) -> (i32, i32) {
    %c0_i32 = arith.constant 0 : i32
    %c0_i32_0 = arith.constant 0 : i32
    %c0_i32_1 = arith.constant 0 : i32
    return %c0_i32, %c0_i32_0 : i32, i32
  }
  func.func @transform_2(%arg0: i32, %arg1: i32) -> (i32, i32, i32) {
    %c0_i32 = arith.constant 0 : i32
    %c0_i32_0 = arith.constant 0 : i32
    return %arg0, %c0_i32, %arg1 : i32, i32, i32
  }
  func.func @transform_3(%arg0: i32, %arg1: i32) -> (i32, i32, i32) {
    %c0_i32 = arith.constant 0 : i32
    %c0_i32_0 = arith.constant 0 : i32
    return %arg0, %c0_i32, %arg1 : i32, i32, i32
  }
  func.func @transform_4(%arg0: i32, %arg1: i32) -> (i32, i32, i32) {
    %c0_i32 = arith.constant 0 : i32
    %c0_i32_0 = arith.constant 0 : i32
    return %arg0, %c0_i32, %arg1 : i32, i32, i32
  }
}

</mosaic_0001>

<bundles_post_ra>
// kernel: tpu_custom_call.1
= control target key start
LH: loop header
LB: loop body
LE: loop exit
PB: predicated region body
PF: predicated region fallthrough
CT: control target
= control target key end

     0   :  { %s1082_s0 = inlined_call_operand.vmem [shape: f32[2,8,256], index: 0, kind: input, shape index: {}]   ;;  %s1083_s1 = inlined_call_operand.vmem [shape: f32[24,8], index: 1, kind: input, shape index: {}]   ;;  %s1084_s2 = inlined_call_operand.hbm [shape: f32[2,8,256], index: 2, kind: output, shape index: {0}]   ;;  %s1085_s3 = inlined_call_operand.hbm [shape: f32[2,8,256], index: 3, kind: output, shape index: {1}]   ;;  %s1086_s4 = inlined_call_operand.hbm [shape: f32[2,8,256], index: 4, kind: output, shape index: {2}]  }
   0x1   :  { %1090 = sst [smem:[#allocation9_spill]] %s1082_s0 }
   0x2   :  { %1091 = sst [smem:[#allocation10_spill]] %s1083_s1 }
   0x3   :  { %10 = vsyncpa [#allocation3], 0 }
   0x4   :  { %12 = vsyncpa [#allocation3 + $0x1], 0 }
   0x5   :  { %13 = vsyncpa [#allocation5], 0 }
   0x6   :  { %15 = vsyncpa [#allocation5 + $0x1], 0  ;;  %s849_s15 = smov 0   ;;  %s851_s16 = smov 0  }
   0x7   :  { %s853_s17 = smov 0   ;;  %s855_s18 = smov 0  }
   0x8   :  { %s857_s19 = smov 0   ;;  %s859_s20 = smov 0  }
   0x9   :  { %s861_s21 = smov 0   ;;  %s863_s22 = smov 0  }
   0xa LB: > { %s539_s23 = sadd.s32 4294967295, %s817_s22   ;;  %s1087_s24 = sadd.s32 4294967294, %s817_s22   ;;  %s817_s22 = sphi %s863_s22, %s21_s22   ;;  %s813_s21 = sphi %s861_s21, %s1105_s21   ;;  %s809_s20 = sphi %s859_s20, %s1104_s20   ;;  %s805_s19 = sphi %s857_s19, %s1103_s19   ;;  %s801_s18 = sphi %s855_s18, %s1102_s18   ;;  %s797_s17 = sphi %s853_s17, %s1101_s17   ;;  %s793_s16 = sphi %s851_s16, %s1100_s16   ;;  %s789_s15 = sphi %s849_s15, %s1099_s15  }
   0xb   : > { %s30_s25 = sadd.s32 1, %s809_s20  ;;  %s33_s26 = sadd.s32 1, %s813_s21 }
   0xc   : > { %p31_p0 = scmp.ge.s32.totalorder %s30_s25, 2  ;;  %p101_p1 = scmp.ne.s32.totalorder %s797_s17, %s793_s16 }
   0xd   : > { %p102_p2 = scmp.eq.s32.totalorder %s539_s23, 3  ;;  %p107_p5 = scmp.ne.s32.totalorder %s793_s16, %s789_s15 }
   0xe   : > { %s1107_s25 = smov (%p31_p0, %s30_s25), 0  ;;  %s1109_s26 = smov (!%p31_p0, %s33_s26), %s813_s21 }
   0xf   : > { %s87_s27 = ssub.s32 %s809_s20, %s1107_s25  ;;  %p902_p3 = por %p102_p2, %p101_p1 }
  0x10   : > { %p35_p4 = scmp.ge.s32.totalorder %s1109_s26, 2  ;;  %p108_p6 = scmp.eq.s32.totalorder %s1087_s24, 3 }
  0x11   : > { %p543_p7 = scmp.ge.s32.totalorder %s817_s22, 1  ;;  %p196_p9 = scmp.lt.s32.totalorder %s817_s22, 5 }
  0x12   : > { %s1111_s26 = smov (%p35_p4, %s1109_s26), 0  ;;  %p913_p8 = por %p108_p6, %p107_p5 }
  0x13   : > { %s86_s30 = ssub.s32 %s813_s21, %s1111_s26  ;;  %s91_s5 = sadd.s32 1, %s797_s17 }
  0x14   : > { %s88_s6 = sor.u32 %s87_s27, %s86_s30  ;;  %p197_p10 = pnand %p543_p7, %p196_p9 }
  0x15   : > { %p89_p11 = scmp.eq.s32.totalorder %s88_s6, 0  ;;  %p235_p12 = scmp.lt.s32.totalorder (!%p197_p10), %s805_s19, 1  ;;  %v819_v0 = vmov (!%p197_p10), 0.0   ;;  %vm820_vm0 = vmmov (!%p197_p10), 0   ;;  %vm247_vm1 = vcmask (!%p197_p10), 64512  }
  0x16   : > { %200 = sbr.rel (%p197_p10) target bundleno = 316 (0x13c), region = 28  ;;  %p237_p13 = scmp.lt.s32.totalorder (!%p197_p10), %s801_s18, 1  ;;  %578 = vmatprep.subr.mxu1 (!%p197_p10), %v819_v0  ;;  %572 = vmatprep.mubr.msk.f32.mxu1 (!%p197_p10), %vm820_vm0, %v819_v0 }
  0x17   : > { %s922_s7 = scalar_select %p89_p11, %s797_s17, %s91_s5  }
  0x18   : > { %567 = vmatprep.subr.mxu0 (!%p197_p10), %v819_v0  ;;  %569 = vmatprep.mubr.msk.f32.mxu0 (!%p197_p10), %vm820_vm0, %v819_v0  ;;  %s1094_s0 = sld [smem:[#allocation9_spill]] (!%p197_p10)  ;;  %s1095_s1 = sld [smem:[#allocation10_spill]] (!%p197_p10) }
  0x19   : > { %s555_s24 = sshll.u32 (!%p197_p10), %s805_s19, 1  ;;  %s954_s5 = sand.u32 (!%p197_p10), 1, %s539_s23  }
  0x1d   : > { %s236_s8 = scalar_select %p235_p12, %s805_s19, 1 }
  0x1e   : > { %s238_s9 = scalar_select %p237_p13, %s801_s18, 1  ;;  %v244_v1 = vld [vmem:[%s1095_s1 + $0x8] sm:$0xff]  ;;  %v243_v2 = vld [vmem:[%s1095_s1] sm:$0xff]  ;;  %v245_v4 = vld [vmem:[%s1095_s1 + $0x10] sm:$0xff] }
  0x1f   : > { %s547_s10 = sshll.u32 %s236_s8, 1 }
  0x20   : > { %s240_s11 = sadd.s32 %s547_s10, %s238_s9  ;;  %s1088_s10 = sand.u32 1, %s793_s16  }
  0x21   : > { %s548_s12 = sshll.u32 %s240_s11, 3  ;;  %s946_s11 = sshll.u32 %s1088_s10, 3 }
  0x22   : > { %s242_s27 = scalar_lea.vmem %s1094_s0, %s548_s12  ;;  %s362_s12 = sadd.s32 %s801_s18, %s555_s24 }
  0x23   : > { %v246_v3 = vld [vmem:[%s242_s27] sm:$0xff]  ;;  %s227_s13 = scalar_lea.vmem [#allocation4], %s946_s11  ;;  %s220_s27 = scalar_lea.vmem [#allocation2], %s946_s11 }
  0x24   : > { %579 = vmatpush3.msra.mxu1 %v246_v3  ;;  %568 = vmatpush3.msra.mxu0 %v246_v3  ;;  %s381_s14 = sshll.u32 %s227_s13, 4  ;;  %s366_s30 = sshll.u32 %s220_s27, 4  ;;  %s956_s14 = int_to_ptr.vmem [resolvable:$true] %s381_s14  ;;  %s958_s30 = int_to_ptr.vmem [resolvable:$true] %s366_s30 }
  0x25   : > { %573 = vmatmul.mubr.msk.f32.vlgmr.msra.gmra.mrb[0].mxu1 %vm247_vm1, %v244_v1  ;;  %570 = vmatmul.mubr.msk.f32.vlgmr.msra.gmra.mrb[0].mxu0 %vm247_vm1, %v243_v2  ;;  %s556_s6 = sshll.u32 %s362_s12, 7  ;;  %s1089_s8 = scalar_lea.vmem [#allocation6], %s946_s11 }
  0x26   : > { %575 = vmatprep.mubr.msk.f32.mxu1 %vm820_vm0, %v819_v0  ;;  %s396_s19 = sshll.u32 %s1089_s8, 4  ;;  %s966_s24 = scalar_lea.hbm %s1085_s3, %s556_s6  ;;  %s973_s19 = int_to_ptr.vmem [resolvable:$true] %s396_s19 }
  0x27   : > { %s971_s12 = scalar_lea.hbm %s1084_s2, %s556_s6  ;;  %s978_s18 = scalar_lea.hbm %s1086_s4, %s556_s6 }
  0x28   : > { %s346_s9 = scalar_lea.sflag [#allocation5], %s954_s5  ;;  %s663_s1 = scalar_lea.vmem %s956_s14, 128 }
  0x29   : > { %576 = vmatmul.mubr.msk.f32.gmra.mrb[2].mxu1 %vm247_vm1, %v245_v4  ;;  %p664_p0 = scmp.ne.s32.totalorder %s956_s14, %s663_s1  ;;  %s821_s10 = smov [#allocation4]  }
  0x2a   : > { %s667_s23 = sshll.u32 %s821_s10, 4  ;;  %s668_s23 = int_to_ptr.vmem [resolvable:$false] %s667_s23 }
  0x2b   : > { %p665_p1 = pnand %p664_p0, %p902_p3  ;;  %p670_p4 = scmp.lt.s32.totalorder %s956_s14, %s668_s23 }
  0x2d   : > { %p666_p2 = pneg %p665_p1 }
  0xf8   : > { %v328_v5 = vpop.f32.mrb[0].mxu1  ;;  %v323_v6 = vpop.f32.mrb[0].mxu0 }
  0xf9   : > { %338 = vst [vmem:[%s227_s13] sm:$0xff] %v328_v5  ;;  %v574_v7 = vpop.f32.mrb[1].mxu1  ;;  %337 = vst [vmem:[%s220_s27] sm:$0xff] %v323_v6  ;;  %v571_v8 = vpop.f32.mrb[1].mxu0  ;;  %s669_s13 = scalar_lea.vmem %s668_s23, 256 }
  0xfa   : > { %p671_p5 = scmp.lt.s32.totalorder %s669_s13, %s663_s1 }
  0xfc   : > { %p672_p6 = por %p671_p5, %p670_p4 }
  0xfe   : > { %p673_p7 = pnand %p672_p6, %p666_p2 }
 0x100   : > { %676 = shalt.err (!%p673_p7)
}
 0x101   : > { %s677_s0 = scalar_lea.hbm %s966_s24, 128  ;;  %s681_s8 = scalar_lea.hbm %s1085_s3, 512 }
 0x102   : > { %p678_p9 = scmp.ne.s32.totalorder %s966_s24, %s677_s0  ;;  %p682_p12 = scmp.lt.u32.totalorder %s966_s24, %s1085_s3 }
 0x103   : > { %p683_p13 = scmp.lt.u32.totalorder %s681_s8, %s677_s0  ;;  %p685_p1 = scmp.lt.u32.totalorder %s677_s0, %s966_s24 }
 0x104   : > { %p679_p10 = pnand %p678_p9, %p902_p3 }
 0x105   : > { %p684_p0 = por %p683_p13, %p682_p12 }
 0x106   : > { %p680_p11 = pneg %p679_p10 }
 0x107   : > { %p686_p2 = por %p685_p1, %p684_p0 }
 0x109   : > { %p687_p4 = pnand %p686_p2, %p680_p11 }
 0x10b   : > { %690 = shalt.err (!%p687_p4)
}
 0x10c   : > { %581 = dma.vmem_to_hbm [thread:$0]  (%p902_p3), %s956_s14, 128, %s966_s24, %s346_s9  }
 0x10d   : > { %s1096_s1 = sand.u32 1, %s793_s16   ;;  %s691_s27 = scalar_lea.vmem %s958_s30, 128 }
 0x10e   : > { %s341_s13 = scalar_lea.sflag [#allocation3], %s1096_s1  ;;  %p692_p5 = scmp.ne.s32.totalorder %s958_s30, %s691_s27 }
 0x10f   : > { %s822_s0 = smov [#allocation2]  }
 0x110   : > { %p693_p6 = pnand %p692_p5, %p902_p3  ;;  %s695_s6 = sshll.u32 %s822_s0, 4  ;;  %s696_s6 = int_to_ptr.vmem [resolvable:$false] %s695_s6 }
 0x111   : > { %s697_s8 = scalar_lea.vmem %s696_s6, 256  ;;  %p698_p9 = scmp.lt.s32.totalorder %s958_s30, %s696_s6 }
 0x112   : > { %p694_p7 = pneg %p693_p6  ;;  %p699_p10 = scmp.lt.s32.totalorder %s697_s8, %s691_s27 }
 0x114   : > { %p700_p11 = por %p699_p10, %p698_p9 }
 0x116   : > { %p701_p12 = pnand %p700_p11, %p694_p7 }
 0x118   : > { %704 = shalt.err (!%p701_p12)
}
 0x119   : > { %s705_s14 = scalar_lea.hbm %s971_s12, 128  ;;  %s709_s23 = scalar_lea.hbm %s1084_s2, 512 }
 0x11a   : > { %p706_p13 = scmp.ne.s32.totalorder %s971_s12, %s705_s14  ;;  %p710_p2 = scmp.lt.u32.totalorder %s971_s12, %s1084_s2 }
 0x11b   : > { %p711_p4 = scmp.lt.u32.totalorder %s709_s23, %s705_s14  ;;  %p713_p6 = scmp.lt.u32.totalorder %s705_s14, %s971_s12 }
 0x11c   : > { %p707_p0 = pnand %p706_p13, %p902_p3 }
 0x11d   : > { %p712_p5 = por %p711_p4, %p710_p2 }
 0x11e   : > { %p708_p1 = pneg %p707_p0 }
 0x11f   : > { %p714_p7 = por %p713_p6, %p712_p5 }
 0x121   : > { %p715_p9 = pnand %p714_p7, %p708_p1 }
 0x123   : > { %718 = shalt.err (!%p715_p9)
}
 0x124   : > { %580 = dma.vmem_to_hbm [thread:$0]  (%p902_p3), %s958_s30, 128, %s971_s12, %s341_s13   ;;  %v333_v9 = vpop.f32.mrb[2].mxu1 }
 0x125   : > { %s1097_s27 = scalar_lea.vmem [#allocation6], %s946_s11  ;;  %v577_v10 = vpop.f32.mrb[3].mxu1  ;;  %s719_s6 = scalar_lea.vmem %s973_s19, 128 }
 0x126   : > { %339 = vst [vmem:[%s1097_s27] sm:$0xff] %v333_v9  ;;  %p720_p10 = scmp.ne.s32.totalorder %s973_s19, %s719_s6  ;;  %s823_s8 = smov [#allocation6]  }
 0x127   : > { %s723_s14 = sshll.u32 %s823_s8, 4  ;;  %s724_s14 = int_to_ptr.vmem [resolvable:$false] %s723_s14 }
 0x128   : > { %p721_p11 = pnand %p720_p10, %p902_p3  ;;  %s725_s24 = scalar_lea.vmem %s724_s14, 256 }
 0x129   : > { %p726_p13 = scmp.lt.s32.totalorder %s973_s19, %s724_s14  ;;  %p727_p0 = scmp.lt.s32.totalorder %s725_s24, %s719_s6 }
 0x12a   : > { %p722_p12 = pneg %p721_p11 }
 0x12b   : > { %p728_p1 = por %p727_p0, %p726_p13 }
 0x12d   : > { %p729_p2 = pnand %p728_p1, %p722_p12 }
 0x12f   : > { %732 = shalt.err (!%p729_p2)
}
 0x130   : > { %s733_s11 = scalar_lea.hbm %s978_s18, 128  ;;  %s737_s13 = scalar_lea.hbm %s1086_s4, 512 }
 0x131   : > { %p734_p4 = scmp.ne.s32.totalorder %s978_s18, %s733_s11  ;;  %p738_p7 = scmp.lt.u32.totalorder %s978_s18, %s1086_s4 }
 0x132   : > { %p739_p9 = scmp.lt.u32.totalorder %s737_s13, %s733_s11  ;;  %p741_p11 = scmp.lt.u32.totalorder %s733_s11, %s978_s18 }
 0x133   : > { %p735_p5 = pnand %p734_p4, %p902_p3 }
 0x134   : > { %p740_p10 = por %p739_p9, %p738_p7 }
 0x135   : > { %p736_p6 = pneg %p735_p5 }
 0x136   : > { %p742_p12 = por %p741_p11, %p740_p10 }
 0x138   : > { %p743_p13 = pnand %p742_p12, %p736_p6 }
 0x13a   : > { %746 = shalt.err (!%p743_p13)
}
 0x13b   : > { %582 = dma.vmem_to_hbm [thread:$0]  (%p902_p3), %s973_s19, 128, %s978_s18, %s346_s9  }
 0x13c PF: > { %p596_p0 = scmp.ge.s32.totalorder %s817_s22, 2  ;;  %s408_s1 = sand.u32 1, %s789_s15  }
 0x13d   : > { %s409_s0 = scalar_lea.sflag [#allocation3], %s408_s1 }
 0x13e   : > { %p587_p1 = pnand %p596_p0, %p913_p8 }
 0x140   : > { %780 = dma.done.wait (!%p587_p1), %s409_s0, 128  }
 0x141   : > { %782 = vsyncadd (!%p587_p1), %s409_s0, 4294967168  ;;  %s1098_s27 = sadd.s32 4294967294, %s817_s22  }
 0x142   : > { %s417_s6 = sand.u32 1, %s1098_s27  }
 0x143   : > { %s418_s28 = scalar_lea.sflag [#allocation5], %s417_s6 }
 0x144   : > { %784 = dma.done.wait (!%p587_p1), %s418_s28, 256  }
 0x145   : > { %786 = vsyncadd (!%p587_p1), %s418_s28, 4294967040  ;;  %s21_s22 = sadd.s32 1, %s817_s22   ;;  %s1099_s15 = smov %s793_s16 }
 0x146   : > { %p18_p3 = scmp.ge.s32.totalorder %s21_s22, 6   ;;  %s1100_s16 = smov %s797_s17 }
 0x147   : > { %s1101_s17 = smov %s922_s7  ;;  %s1102_s18 = smov %s809_s20 }
 0x148   : > { %s1103_s19 = smov %s813_s21  ;;  %s1104_s20 = smov %s1107_s25 }
 0x149   : > { %s1105_s21 = smov %s1111_s26  ;;  %20 = sbr.rel (!%p18_p3) target bundleno = 10 (0xa), region = 95 }
 0x150   :  { %432 = vsyncpa [#allocation3], 1 }
 0x151   :  { %434 = vsyncpa [#allocation3 + $0x1], 1 }
 0x152   :  { %435 = vsyncpa [#allocation5], 1 }
 0x153   :  { %437 = vsyncpa [#allocation5 + $0x1], 1 }

</bundles_post_ra>
